<compile_context>
chip_gen: v5e
topology: v5e:2x2
jax: 0.10.0
libtpu: 0.0.40
codegen_flags: <defaults>
</compile_context>

<pallas_src>
import math

import jax
import jax.numpy as jnp
from jax import lax
from jax.experimental import pallas as pl
from jax.experimental.pallas import tpu as pltpu

# ----------------------------- constants ------------------------------------
TEMPERATURE = 0.1
INV_TEMP = 1.0 / TEMPERATURE
PAD_TOKEN_ID = 1
LAMBDA_CLS = 1.0
LAMBDA_PTR = 1.0
LAMBDA_EMPTY_PTR = 1.0
LAMBDA_ROW_CONTR = 0.5
LAMBDA_COL_CONTR = 0.5
NEG_INF = -1e9


def _pick_bt(B, cap=8):
    """Largest divisor of B that is <= cap: batch elements folded per grid step."""
    for d in range(min(B, cap), 0, -1):
        if B % d == 0:
            return d
    return 1


def _l2norm(x):
    # matches F.normalize(dim=-1, eps=1e-12)
    n = jnp.sqrt(jnp.sum(x * x, axis=-1, keepdims=True))
    return x / jnp.maximum(n, 1e-12)


# ----------------------------- kernels --------------------------------------
def _cls_kernel(logits_ref, tgt_ref, out_ref):
    # logits_ref: (bt, tt, V) input dtype ; tgt_ref: (bt, tt, 1) i32
    # out_ref:    (1, 1, 2) f32 accumulator [sum(-logp over valid), count(valid)]
    t = pl.program_id(1)

    @pl.when(t == 0)
    def _():
        out_ref[...] = jnp.zeros_like(out_ref)

    logits = logits_ref[...].astype(jnp.float32)               # (bt, tt, V)
    V = logits.shape[-1]
    tgt = tgt_ref[...]                                         # (bt, tt, 1)
    m = jnp.max(logits, axis=-1, keepdims=True)
    lse = jnp.log(jnp.sum(jnp.exp(logits - m), axis=-1, keepdims=True)) + m
    logp = logits - lse                                        # (bt, tt, V)
    col = lax.broadcasted_iota(jnp.int32, logits.shape, 2)
    # where-select instead of materialising an f32 onehot
    tgt_logp = jnp.sum(jnp.where(col == jnp.clip(tgt, 0, V - 1), logp, 0.0),
                       axis=-1, keepdims=True)                 # (bt, tt, 1)
    valid = (tgt != PAD_TOKEN_ID).astype(jnp.float32)          # (bt, tt, 1)
    s = jnp.sum(jnp.sum(-tgt_logp * valid, axis=1, keepdims=True),
                axis=0, keepdims=True)                         # (1, 1, 1)
    c = jnp.sum(jnp.sum(valid, axis=1, keepdims=True),
                axis=0, keepdims=True)                         # (1, 1, 1)
    lane = lax.broadcasted_iota(jnp.int32, (1, 1, 2), 2)
    out_ref[...] += jnp.where(lane == 0, s, c)


def _ptr_empty_kernel(box_ref, tag_ref, idx_ref, dmask_ref, emask_ref,
                      Wb_ref, bb_ref, Wt_ref, btb_ref, eproj_ref, stats_ref):
    # box_ref (bt,N,D), tag_ref (bt,T,D), idx_ref (bt,N,1) i32,
    # dmask_ref (bt,1,T) i32, emask_ref (bt,T,1) i32
    # stats_ref (bt,1,4) f32: [ptr_sum, ptr_cnt, empty_sum, empty_n] per batch.
    bt_sz, N, D = box_ref.shape
    _, T, _ = tag_ref.shape

    # Fold batch into the row dim so the shared-weight projections fill the MXU.
    box2d = box_ref[...].reshape(bt_sz * N, D)
    tag2d = tag_ref[...].reshape(bt_sz * T, D)
    bp2d = jnp.dot(box2d, Wb_ref[...],
                   preferred_element_type=jnp.float32) + bb_ref[...]
    tpraw2d = jnp.dot(tag2d, Wt_ref[...],
                      preferred_element_type=jnp.float32) + btb_ref[...]

    bp = _l2norm(bp2d).reshape(bt_sz, N, D)
    tp = _l2norm(tpraw2d).reshape(bt_sz, T, D)

    # ---- pointer loss ----
    sim = jnp.einsum('bnd,bkd->bnk', bp, tp,
                     preferred_element_type=jnp.float32) * INV_TEMP   # (bt,N,T)
    sim = jnp.where(dmask_ref[...] > 0, sim, NEG_INF)
    m = jnp.max(sim, axis=-1, keepdims=True)
    lse = jnp.log(jnp.sum(jnp.exp(sim - m), axis=-1, keepdims=True)) + m
    logp = sim - lse
    idx = idx_ref[...]                                                # (bt,N,1)
    col = lax.broadcasted_iota(jnp.int32, sim.shape, 2)
    tgt_logp = jnp.sum(jnp.where(col == jnp.clip(idx, 0, T - 1), logp, 0.0),
                       axis=-1, keepdims=True)                        # (bt,N,1)
    valid = (idx != PAD_TOKEN_ID).astype(jnp.float32)                 # (bt,N,1)
    ptr_sum = jnp.sum(-tgt_logp * valid, axis=1, keepdims=True)       # (bt,1,1)
    ptr_cnt = jnp.sum(valid, axis=1, keepdims=True)                   # (bt,1,1)

    # ---- empty-pointer loss (reuses the raw tag projection) ----
    # (.,D)x(D,1) would waste an MXU pass: do it as a VPU multiply + lane reduce.
    logits = jnp.sum(tpraw2d * eproj_ref[...], axis=-1, keepdims=True)  # (bt*T,1)
    logits = jnp.clip(logits * INV_TEMP, -100.0, 100.0).reshape(bt_sz, T, 1)
    em = emask_ref[...].astype(jnp.float32)                           # (bt,T,1)
    # stable BCE-with-logits: max(x,0) - x*z + log(1 + exp(-|x|))
    bce = (jnp.maximum(logits, 0.0) - logits * em +
           jnp.log1p(jnp.exp(-jnp.abs(logits))))
    empty_sum = jnp.sum(bce * em, axis=1, keepdims=True)              # (bt,1,1)
    empty_n = jnp.maximum(jnp.sum(em, axis=1, keepdims=True), 1.0)    # (bt,1,1)

    lane = lax.broadcasted_iota(jnp.int32, (bt_sz, 1, 4), 2)
    stats_ref[...] = jnp.where(lane == 0, ptr_sum,
                       jnp.where(lane == 1, ptr_cnt,
                         jnp.where(lane == 2, empty_sum, empty_n)))


def _span_kernel(feat_ref, rsp_ref, csp_ref, Ws_ref, bs_ref, out_ref):
    # feat_ref (bt,N,D), rsp_ref/csp_ref (bt,N,S)
    # out_ref (1,1,2) f32: [row_tile_sum, col_tile_sum] of per-row losses.
    bt_sz, N, D = feat_ref.shape

    feat2d = feat_ref[...].reshape(bt_sz * N, D)
    p = _l2norm(jnp.dot(feat2d, Ws_ref[...],
                        preferred_element_type=jnp.float32) + bs_ref[...])
    p = p.reshape(bt_sz, N, D)
    # projection + similarity + exp computed ONCE, shared by row & col masks.
    sim = jnp.einsum('bnd,bmd->bnm', p, p,
                     preferred_element_type=jnp.float32) * INV_TEMP   # (bt,N,N)
    exp_sim = jnp.exp(sim)
    ri = lax.broadcasted_iota(jnp.int32, (bt_sz, N, N), 1)
    ci = lax.broadcasted_iota(jnp.int32, (bt_sz, N, N), 2)
    offdiag = ri != ci

    def span_sum(spans):
        spans = spans.astype(jnp.float32)
        overlap = jnp.einsum('bns,bms->bnm', spans, spans,
                             preferred_element_type=jnp.float32)      # (bt,N,N)
        sizes = jnp.sum(spans, axis=-1, keepdims=True)                # (bt,N,1)
        # K=1 batched matmul kept deliberately: guaranteed Mosaic lowering and
        # negligible cost next to the overlap/sim matmuls.
        sizes_outer = jnp.einsum('bni,bmi->bnm', sizes, sizes,
                                 preferred_element_type=jnp.float32)  # (bt,N,N)
        coef = overlap * pl.reciprocal(sizes_outer + 1e-8, approx=True)
        pos = (coef > 0) & offdiag
        neg = offdiag & jnp.logical_not(pos)
        denom = jnp.sum(exp_sim * neg.astype(jnp.float32),
                        axis=-1, keepdims=True) + 1e-8
        log_prob = sim - jnp.log(denom)
        loss_mat = -(coef * log_prob * pos.astype(jnp.float32))
        num_pos = jnp.sum(pos.astype(jnp.float32), axis=-1, keepdims=True)
        row_loss = (jnp.sum(loss_mat, axis=-1, keepdims=True) *
                    pl.reciprocal(num_pos + 1e-8, approx=True))       # (bt,N,1)
        return jnp.sum(jnp.sum(row_loss, axis=1, keepdims=True),
                       axis=0, keepdims=True)                         # (1,1,1)

    r = span_sum(rsp_ref[...])
    c = span_sum(csp_ref[...])
    lane = lax.broadcasted_iota(jnp.int32, (1, 1, 2), 2)
    out_ref[...] = jnp.where(lane == 0, r, c)


# ----------------------------- wrappers -------------------------------------
def cls_loss_pallas(tag_logits, tag_targets, block_t=None):
    B, T, V = tag_logits.shape
    bt = _pick_bt(B)
    tt = T if block_t is None else block_t     # set block_t (mult. of 8) to tile
    assert T % tt == 0                         # long sequences on v7x (64MiB VMEM)
    gb, gt = B // bt, T // tt
    tgt = tag_targets.reshape(B, T, 1).astype(jnp.int32)
    out = pl.pallas_call(
        _cls_kernel,
        grid=(gb, gt),
        in_specs=[
            pl.BlockSpec((bt, tt, V), lambda b, t: (b, t, 0)),
            pl.BlockSpec((bt, tt, 1), lambda b, t: (b, t, 0)),
        ],
        out_specs=pl.BlockSpec((1, 1, 2), lambda b, t: (b, 0, 0)),
        out_shape=jax.ShapeDtypeStruct((gb, 1, 2), jnp.float32),
        compiler_params=pltpu.CompilerParams(
            dimension_semantics=("parallel", "arbitrary")),
    )(tag_logits, tgt)
    total = jnp.sum(out[:, 0, 0])
    count = jnp.sum(out[:, 0, 1])
    # F.cross_entropy mean over non-ignored tokens of the flattened batch.
    return total / jnp.maximum(count, 1.0)


def ptr_empty_loss_pallas(box_features, tag_features, box_indices,
                          data_tag_mask, empty_mask, params):
    B, N, D = box_features.shape
    _, T, _ = tag_features.shape
    bt = _pick_bt(B)
    idx = box_indices[:, :N].reshape(B, N, 1).astype(jnp.int32)
    dmask = data_tag_mask.reshape(B, 1, T).astype(jnp.int32)
    em = empty_mask.reshape(B, T, 1).astype(jnp.int32)
    bb = params["bb"].reshape(1, D)
    btb = params["bt"].reshape(1, D)
    # empty_proj = box_proj(empty_embedding): tiny (1,D) linear left in plain JAX.
    eproj = (params["empty_emb"] @ params["Wb"] + params["bb"]).reshape(1, D)

    # NOTE: for very large D (v7x, 64 MiB VMEM) the two f32 DxD weight blocks
    # should be streamed in bf16 or staged once via a manual copy.
    stats = pl.pallas_call(
        _ptr_empty_kernel,
        grid=(B // bt,),
        in_specs=[
            pl.BlockSpec((bt, N, D), lambda b: (b, 0, 0)),
            pl.BlockSpec((bt, T, D), lambda b: (b, 0, 0)),
            pl.BlockSpec((bt, N, 1), lambda b: (b, 0, 0)),
            pl.BlockSpec((bt, 1, T), lambda b: (b, 0, 0)),
            pl.BlockSpec((bt, T, 1), lambda b: (b, 0, 0)),
            pl.BlockSpec((D, D), lambda b: (0, 0)),
            pl.BlockSpec((1, D), lambda b: (0, 0)),
            pl.BlockSpec((D, D), lambda b: (0, 0)),
            pl.BlockSpec((1, D), lambda b: (0, 0)),
            pl.BlockSpec((1, D), lambda b: (0, 0)),
        ],
        out_specs=pl.BlockSpec((bt, 1, 4), lambda b: (b, 0, 0)),
        out_shape=jax.ShapeDtypeStruct((B, 1, 4), jnp.float32),
        compiler_params=pltpu.CompilerParams(dimension_semantics=("parallel",)),
    )(box_features, tag_features, idx, dmask, em,
      params["Wb"], bb, params["Wt"], btb, eproj)

    ptr_total = jnp.sum(stats[:, 0, 0])
    ptr_count = jnp.sum(stats[:, 0, 1])
    ptr_loss = jnp.where(ptr_count > 0,
                         jnp.clip(ptr_total / jnp.maximum(ptr_count, 1.0),
                                  0.0, 10.0),
                         0.0)
    s = stats[:, 0, 2]
    n = stats[:, 0, 3]
    # Reproduce PyTorch (B,) / (B,1) broadcasting -> (B,B), then mean (as in ref).
    empty_loss = jnp.mean(s[None, :] / n[:, None])
    return ptr_loss, empty_loss


def span_contr_loss_pallas(features, row_spans, col_spans, params):
    B, N, D = features.shape
    S = row_spans.shape[-1]
    bt = _pick_bt(B)
    bs = params["bs"].reshape(1, D)
    out = pl.pallas_call(
        _span_kernel,
        grid=(B // bt,),
        in_specs=[
            pl.BlockSpec((bt, N, D), lambda b: (b, 0, 0)),
            pl.BlockSpec((bt, N, S), lambda b: (b, 0, 0)),
            pl.BlockSpec((bt, N, S), lambda b: (b, 0, 0)),
            pl.BlockSpec((D, D), lambda b: (0, 0)),
            pl.BlockSpec((1, D), lambda b: (0, 0)),
        ],
        out_specs=pl.BlockSpec((1, 1, 2), lambda b: (b, 0, 0)),
        out_shape=jax.ShapeDtypeStruct((B // bt, 1, 2), jnp.float32),
        compiler_params=pltpu.CompilerParams(dimension_semantics=("parallel",)),
    )(features, row_spans.astype(jnp.float32), col_spans.astype(jnp.float32),
      params["Ws"], bs)
    denom = float(B * N)
    row_loss = jnp.sum(out[:, 0, 0]) / denom
    col_loss = jnp.sum(out[:, 0, 1]) / denom
    return row_loss, col_loss


def tflop_loss(params, tag_logits, tag_targets, box_features, tag_features,
               box_indices, data_tag_mask, empty_mask,
               row_spans=None, col_spans=None):
    cls_loss = cls_loss_pallas(tag_logits, tag_targets)
    ptr_loss, empty_ptr_loss = ptr_empty_loss_pallas(
        box_features, tag_features, box_indices, data_tag_mask, empty_mask,
        params)
    if row_spans is not None and col_spans is not None:
        row_contr_loss, col_contr_loss = span_contr_loss_pallas(
            box_features, row_spans, col_spans, params)
    else:
        row_contr_loss = jnp.float32(0.0)
        col_contr_loss = jnp.float32(0.0)
    total = (LAMBDA_CLS * cls_loss + LAMBDA_PTR * ptr_loss +
             LAMBDA_EMPTY_PTR * empty_ptr_loss +
             LAMBDA_ROW_CONTR * row_contr_loss +
             LAMBDA_COL_CONTR * col_contr_loss)
    return {
        "loss": total,
        "cls_loss": cls_loss,
        "ptr_loss": ptr_loss,
        "empty_ptr_loss": empty_ptr_loss,
        "row_contr_loss": row_contr_loss,
        "col_contr_loss": col_contr_loss,
    }


def init_params(key, feature_dim):
    # nn.Linear-style init. Weights are stored PRE-TRANSPOSED, i.e. (in, out)
    # layout applied as x @ W + b (avoids per-call transposes in the wrapper).
    k = 1.0 / math.sqrt(feature_dim)
    ks = jax.random.split(key, 6)
    u = lambda kk, shape: jax.random.uniform(kk, shape, jnp.float32, -k, k)
    return {
        "Wb": u(ks[0], (feature_dim, feature_dim)),
        "bb": u(ks[1], (feature_dim,)),
        "Wt": u(ks[2], (feature_dim, feature_dim)),
        "bt": u(ks[3], (feature_dim,)),
        "Ws": u(ks[4], (feature_dim, feature_dim)),
        "bs": u(ks[5], (feature_dim,)),
        "empty_emb": jnp.zeros((1, feature_dim), jnp.float32),  # as in __init__
    }


if __name__ == "__main__":
    B, T, V, N, D, S = 2, 16, 16, 8, 32, 8

    root = jax.random.PRNGKey(0)
    kp, *ks = jax.random.split(root, 11)
    params = init_params(kp, D)

    tag_logits = jax.random.normal(ks[0], (B, T, V), jnp.float32)
    tag_targets = jax.random.randint(ks[1], (B, T), 0, V, jnp.int32)
    box_features = jax.random.normal(ks[2], (B, N, D), jnp.float32)
    tag_features = jax.random.normal(ks[3], (B, T, D), jnp.float32)
    box_indices = jax.random.randint(ks[4], (B, N), 0, T, jnp.int32)
    data_tag_mask = jax.random.bernoulli(ks[5], 0.7, (B, T))
    data_tag_mask = data_tag_mask.at[:, 0].set(True)
    empty_mask = jax.random.bernoulli(ks[6], 0.5, (B, T))
    empty_mask = empty_mask.at[:, 0].set(True)
    row_spans = jax.random.bernoulli(ks[7], 0.5, (B, N, S)).astype(jnp.float32)
    row_spans = row_spans.at[:, :, 0].set(1.0)
    col_spans = jax.random.bernoulli(ks[8], 0.5, (B, N, S)).astype(jnp.float32)
    col_spans = col_spans.at[:, :, 0].set(1.0)

    out = tflop_loss(params, tag_logits, tag_targets, box_features, tag_features,
                     box_indices, data_tag_mask, empty_mask, row_spans, col_spans)
    jax.block_until_ready(out["loss"])
    print("KERNEL_OK")
</pallas_src>

<mosaic_0001>
module attributes {stable_mosaic.version = 11 : i64} {
  func.func @_cls_kernel(%arg0: i32, %arg1: i32, %arg2: memref<2x16x16xf32, #tpu.memory_space<vmem>>, %arg3: memref<2x16x1xi32, #tpu.memory_space<vmem>>, %arg4: memref<1x1x2xf32, #tpu.memory_space<vmem>>) attributes {dimension_semantics = [#tpu.dimension_semantics<parallel>, #tpu.dimension_semantics<arbitrary>], iteration_bounds = array<i64: 1, 1>, scalar_prefetch = 0 : i64, scratch_operands = 0 : i64, tpu.core_type = #tpu.core_type<tc>, window_params = [{transform_indices = @transform_0, window_bounds = array<i64: 2, 16, 16>}, {transform_indices = @transform_1, window_bounds = array<i64: 2, 16, 1>}, {transform_indices = @transform_2, window_bounds = array<i64: 1, 1, 2>}]} {
    %c0_i32 = arith.constant 0 : i32
    %0 = arith.cmpi eq, %arg1, %c0_i32 : i32
    %1 = arith.extui %0 : i1 to i32
    %c0_i32_0 = arith.constant 0 : i32
    %2 = arith.cmpi ne, %1, %c0_i32_0 : i32
    scf.if %2 {
      %cst_22 = arith.constant 0.000000e+00 : f32
      %53 = vector.broadcast %cst_22 : f32 to vector<1x1x2xf32>
      %c0_23 = arith.constant 0 : index
      %c0_24 = arith.constant 0 : index
      %c0_25 = arith.constant 0 : index
      %54 = vector.load %arg4[%c0_23, %c0_24, %c0_25] : memref<1x1x2xf32, #tpu.memory_space<vmem>>, vector<1x1x2xf32>
      tpu.vector_store %arg4[%c0_23, %c0_24, %c0_25], %53 {strides = array<i32>} : memref<1x1x2xf32, #tpu.memory_space<vmem>>, vector<1x1x2xf32>,
    } else {
    }
    %c0 = arith.constant 0 : index
    %c0_1 = arith.constant 0 : index
    %c0_2 = arith.constant 0 : index
    %3 = vector.load %arg2[%c0, %c0_1, %c0_2] : memref<2x16x16xf32, #tpu.memory_space<vmem>>, vector<2x16x16xf32>
    %c0_3 = arith.constant 0 : index
    %c0_4 = arith.constant 0 : index
    %c0_5 = arith.constant 0 : index
    %4 = vector.load %arg3[%c0_3, %c0_4, %c0_5] : memref<2x16x1xi32, #tpu.memory_space<vmem>>, vector<2x16x1xi32>
    %cst = arith.constant dense<0xFF800000> : vector<2x16xf32>
    %5 = vector.multi_reduction <maximumf>, %3, %cst [2] : vector<2x16x16xf32> to vector<2x16xf32>
    %6 = vector.shape_cast %5 : vector<2x16xf32> to vector<2x16x1xf32>
    %7 = vector.broadcast %6 : vector<2x16x1xf32> to vector<2x16x16xf32>
    %8 = arith.subf %3, %7 : vector<2x16x16xf32>
    %9 = math.exp %8 : vector<2x16x16xf32>
    %cst_6 = arith.constant dense<0.000000e+00> : vector<2x16xf32>
    %10 = vector.multi_reduction <add>, %9, %cst_6 [2] : vector<2x16x16xf32> to vector<2x16xf32>
    %11 = vector.shape_cast %10 : vector<2x16xf32> to vector<2x16x1xf32>
    %12 = math.log %11 : vector<2x16x1xf32>
    %13 = arith.addf %12, %6 : vector<2x16x1xf32>
    %14 = vector.broadcast %13 : vector<2x16x1xf32> to vector<2x16x16xf32>
    %15 = arith.subf %3, %14 : vector<2x16x16xf32>
    %16 = tpu.iota {dimensions = array<i32: 2>} : vector<2x16x16xi32>
    %c0_i32_7 = arith.constant 0 : i32
    %c15_i32 = arith.constant 15 : i32
    %17 = vector.broadcast %c0_i32_7 : i32 to vector<2x16x1xi32>
    %18 = arith.maxsi %17, %4 : vector<2x16x1xi32>
    %19 = vector.broadcast %c15_i32 : i32 to vector<2x16x1xi32>
    %20 = arith.minsi %19, %18 : vector<2x16x1xi32>
    %21 = vector.broadcast %20 : vector<2x16x1xi32> to vector<2x16x16xi32>
    %22 = arith.cmpi eq, %16, %21 : vector<2x16x16xi32>
    %cst_8 = arith.constant 0.000000e+00 : f32
    %23 = vector.broadcast %cst_8 : f32 to vector<2x16x16xf32>
    %24 = arith.select %22, %15, %23 : vector<2x16x16xi1>, vector<2x16x16xf32>
    %cst_9 = arith.constant dense<0.000000e+00> : vector<2x16xf32>
    %25 = vector.multi_reduction <add>, %24, %cst_9 [2] : vector<2x16x16xf32> to vector<2x16xf32>
    %26 = vector.shape_cast %25 : vector<2x16xf32> to vector<2x16x1xf32>
    %c1_i32 = arith.constant 1 : i32
    %27 = vector.broadcast %c1_i32 : i32 to vector<2x16x1xi32>
    %28 = arith.cmpi ne, %4, %27 : vector<2x16x1xi32>
    %29 = arith.extui %28 : vector<2x16x1xi1> to vector<2x16x1xi32>
    %30 = arith.sitofp %29 : vector<2x16x1xi32> to vector<2x16x1xf32>
    %cst_10 = arith.constant 0.000000e+00 : f32
    %31 = vector.broadcast %cst_10 : f32 to vector<2x16x1xf32>
    %32 = arith.subf %31, %26 : vector<2x16x1xf32>
    %33 = arith.mulf %32, %30 : vector<2x16x1xf32>
    %cst_11 = arith.constant dense<0.000000e+00> : vector<2x1xf32>
    %34 = vector.multi_reduction <add>, %33, %cst_11 [1] : vector<2x16x1xf32> to vector<2x1xf32>
    %35 = vector.shape_cast %34 : vector<2x1xf32> to vector<2x1x1xf32>
    %cst_12 = arith.constant dense<0.000000e+00> : vector<1x1xf32>
    %36 = vector.multi_reduction <add>, %35, %cst_12 [0] : vector<2x1x1xf32> to vector<1x1xf32>
    %37 = vector.shape_cast %36 : vector<1x1xf32> to vector<1x1x1xf32>
    %cst_13 = arith.constant dense<0.000000e+00> : vector<2x1xf32>
    %38 = vector.multi_reduction <add>, %30, %cst_13 [1] : vector<2x16x1xf32> to vector<2x1xf32>
    %39 = vector.shape_cast %38 : vector<2x1xf32> to vector<2x1x1xf32>
    %cst_14 = arith.constant dense<0.000000e+00> : vector<1x1xf32>
    %40 = vector.multi_reduction <add>, %39, %cst_14 [0] : vector<2x1x1xf32> to vector<1x1xf32>
    %41 = vector.shape_cast %40 : vector<1x1xf32> to vector<1x1x1xf32>
    %42 = tpu.iota {dimensions = array<i32: 2>} : vector<1x1x2xi32>
    %c0_15 = arith.constant 0 : index
    %c0_16 = arith.constant 0 : index
    %c0_17 = arith.constant 0 : index
    %43 = vector.load %arg4[%c0_15, %c0_16, %c0_17] : memref<1x1x2xf32, #tpu.memory_space<vmem>>, vector<1x1x2xf32>
    %c0_i32_18 = arith.constant 0 : i32
    %44 = vector.broadcast %c0_i32_18 : i32 to vector<1x1x2xi32>
    %45 = arith.cmpi eq, %42, %44 : vector<1x1x2xi32>
    %46 = vector.shape_cast %37 : vector<1x1x1xf32> to vector<1x1x1xf32>
    %47 = vector.broadcast %46 : vector<1x1x1xf32> to vector<1x1x2xf32>
    %48 = vector.shape_cast %41 : vector<1x1x1xf32> to vector<1x1x1xf32>
    %49 = vector.broadcast %48 : vector<1x1x1xf32> to vector<1x1x2xf32>
    %50 = arith.select %45, %47, %49 : vector<1x1x2xi1>, vector<1x1x2xf32>
    %51 = arith.addf %43, %50 : vector<1x1x2xf32>
    %c0_19 = arith.constant 0 : index
    %c0_20 = arith.constant 0 : index
    %c0_21 = arith.constant 0 : index
    %52 = vector.load %arg4[%c0_19, %c0_20, %c0_21] : memref<1x1x2xf32, #tpu.memory_space<vmem>>, vector<1x1x2xf32>
    tpu.vector_store %arg4[%c0_19, %c0_20, %c0_21], %51 {strides = array<i32>} : memref<1x1x2xf32, #tpu.memory_space<vmem>>, vector<1x1x2xf32>,
    return
  }
  func.func @transform_0(%arg0: i32, %arg1: i32) -> (i32, i32, i32) {
    %c0_i32 = arith.constant 0 : i32
    %c0_i32_0 = arith.constant 0 : i32
    return %arg0, %arg1, %c0_i32 : i32, i32, i32
  }
  func.func @transform_1(%arg0: i32, %arg1: i32) -> (i32, i32, i32) {
    %c0_i32 = arith.constant 0 : i32
    %c0_i32_0 = arith.constant 0 : i32
    return %arg0, %arg1, %c0_i32 : i32, i32, i32
  }
  func.func @transform_2(%arg0: i32, %arg1: i32) -> (i32, i32, i32) {
    %c0_i32 = arith.constant 0 : i32
    %c0_i32_0 = arith.constant 0 : i32
    %c0_i32_1 = arith.constant 0 : i32
    return %arg0, %c0_i32, %c0_i32_0 : i32, i32, i32
  }
}

</mosaic_0001>

<bundles_post_ra>
// kernel: tpu_custom_call.1
= control target key start
LH: loop header
LB: loop body
LE: loop exit
PB: predicated region body
PF: predicated region fallthrough
CT: control target
= control target key end

     0   :  { %vm26_vm0 = vcmask 130048   ;;  %v276_v4 = vmov 0   ;;  %s414_s0 = inlined_call_operand.vmem [shape: f32[2,16,16], index: 0, kind: input, shape index: {}]   ;;  %s415_s1 = inlined_call_operand.vmem [shape: s32[2,16,1], index: 1, kind: input, shape index: {}]   ;;  %s416_s2 = inlined_call_operand.hbm [shape: f32[1,1,2], index: 2, kind: output, shape index: {}]  }
   0x1   :  { %v297_v0 = vld [vmem:[%s414_s0 + $0x10] sm:$0xff]  ;;  %v302_v1 = vld [vmem:[%s414_s0] sm:$0xff]  ;;  %231 = vset.pattern.permute.xlu2 %v276_v4  ;;  %232 = vset.pattern.permute.xlu0 %v276_v4 }
   0x2   :  { %v33_v2 = vsel %vm26_vm0, %v297_v0, -inf  ;;  %v27_v3 = vsel %vm26_vm0, %v302_v1, -inf  ;;  %v311_v5 = vld [vmem:[%s415_s1] sm:$0xff] }
   0x3   :  { %34 = vmax.xlane.f32.xlu1 %v33_v2  ;;  %28 = vmax.xlane.f32.xlu0 %v27_v3  ;;  %vm81_vm1 = vcmp.gt.s32.totalorder %v311_v5, 0 }
   0x4   :  { %7 = vsyncpa [#allocation3], 0  ;;  %v82_v6 = vsel %vm81_vm1, %v311_v5, 0  ;;  %233 = vset.pattern.permute.xlu1 %v276_v4  ;;  %v318_v7 = vld [vmem:[%s414_s0 + $0x18] sm:$0xff]  ;;  %v323_v8 = vld [vmem:[%s414_s0 + $0x8] sm:$0xff]  ;;  %vm129_vm9 = vcmp.ne.s32.totalorder %v311_v5, 1  ;;  %v79_v43 = vlaneseq }
   0x5   :  { %vm89_vm2 = vcmp.lt.s32.totalorder %v82_v6, 15  ;;  %v36_v10 = vsel %vm26_vm0, %v318_v7, -inf  ;;  %v30_v11 = vsel %vm26_vm0, %v323_v8, -inf  ;;  %v23_v28 = vld [vmem:[%s415_s1 + $0x8] sm:$0xff]  ;;  %v25_v35 = vld [vmem:[%s415_s1 + $0x18] sm:$0xff]  ;;  %v24_v36 = vld [vmem:[%s415_s1 + $0x10] sm:$0xff] }
   0x6   :  { %v90_v9 = vsel %vm89_vm2, %v82_v6, 15  ;;  %vm83_vm3 = vcmp.gt.s32.totalorder %v23_v28, 0  ;;  %vm87_vm5 = vcmp.gt.s32.totalorder %v25_v35, 0  ;;  %vm85_vm6 = vcmp.gt.s32.totalorder %v24_v36, 0  ;;  %s278_s1 = smov [#allocation2]   ;;  %s215_s27 = sshll.u32 %s416_s2, 4  ;;  %s216_s27 = int_to_ptr.hbm [resolvable:$true] %s215_s27 }
   0x7   :  { %98 = vperm.xlu2 %231, %v90_v9   ;;  %v84_v33 = vsel %vm83_vm3, %v23_v28, 0  ;;  %v88_v37 = vsel %vm87_vm5, %v25_v35, 0  ;;  %v86_v38 = vsel %vm85_vm6, %v24_v36, 0  ;;  %vm130_vm10 = vcmp.ne.s32.totalorder %v23_v28, 1  ;;  %s213_s24 = sshll.u32 %s278_s1, 4  ;;  %s214_s24 = int_to_ptr.vmem [resolvable:$true] %s213_s24 }
   0x8   :  { %vm91_vm4 = vcmp.lt.s32.totalorder %v84_v33, 15  ;;  %vm95_vm7 = vcmp.lt.s32.totalorder %v88_v37, 15  ;;  %vm93_vm8 = vcmp.lt.s32.totalorder %v86_v38, 15  ;;  %vm132_vm11 = vcmp.ne.s32.totalorder %v25_v35, 1 }
   0x9   :  { %v92_v34 = vsel %vm91_vm4, %v84_v33, 15  ;;  %v96_v39 = vsel %vm95_vm7, %v88_v37, 15  ;;  %v94_v40 = vsel %vm93_vm8, %v86_v38, 15  ;;  %vm131_vm12 = vcmp.ne.s32.totalorder %v24_v36, 1 }
   0xa   :  { %vm149_vm13 = vcmask 7168   ;;  %v277_v44 = vmov 0.0   ;;  %v373_v54 = vand.u32 127, %v79_v43 }
   0xb   :  { %37 = vmax.xlane.f32.xlu1 %v36_v10  ;;  %31 = vmax.xlane.f32.xlu0 %v30_v11  ;;  %v360_v45 = vsel %vm129_vm9, 1.0, %v277_v44  ;;  %v363_v47 = vsel %vm130_vm10, 1.0, %v277_v44  ;;  %v366_v48 = vsel %vm132_vm11, 1.0, %v277_v44  ;;  %v369_v49 = vsel %vm131_vm12, 1.0, %v277_v44 }
   0xc   :  { %v171_v53 = vsel %vm149_vm13, %v360_v45, 0.0  ;;  %v172_v55 = vsel %vm149_vm13, %v363_v47, 0.0  ;;  %v181_v56 = vsel %vm149_vm13, %v366_v48, 0.0  ;;  %v180_v57 = vsel %vm149_vm13, %v369_v49, 0.0 }
   0xd   :  { %v173_v61 = vadd.f32 %v172_v55, %v171_v53  ;;  %v182_v62 = vadd.f32 %v181_v56, %v180_v57  ;;  %vm193_vm3 = vcmp.eq.s32.totalorder %v373_v54, 0 }
   0xf   :  { %v174_v9 = vrot.slane %v173_v61, 4  ;;  %v183_v10 = vrot.slane %v182_v62, 4 }
  0x61   :  { %v99_v41 = vpop.permute.xlu2 %98 }
  0x62   :  { %vm109_vm14 = vcmp.eq.s32.totalorder %v373_v54, %v99_v41 }
  0x76   :  { %v329_v12 = vpop.xlane.xlu1 %34  ;;  %v331_v13 = vpop.xlane.xlu0 %28 }
  0x77   :  { %v41_v14 = vsub.f32 %v297_v0, %v329_v12  ;;  %v39_v15 = vsub.f32 %v302_v1, %v331_v13 }
  0x79   :  { %v47_v16 = vmul.f32 1.442695, %v41_v14  ;;  %v43_v17 = vmul.f32 1.442695, %v39_v15 }
  0x7b   :  { %234 = vpow2.f32 %v47_v16 }
  0x7c   :  { %236 = vpow2.f32 %v43_v17 }
  0x7e   :  { %v337_v18 = vpop.xlane.xlu1 %37  ;;  %v339_v19 = vpop.xlane.xlu0 %31 }
  0x7f   :  { %v42_v20 = vsub.f32 %v318_v7, %v337_v18  ;;  %v40_v21 = vsub.f32 %v323_v8, %v339_v19 }
  0x81   :  { %v235_v22 = vpop.eup %234  ;;  %v49_v23 = vmul.f32 1.442695, %v42_v20  ;;  %v45_v24 = vmul.f32 1.442695, %v40_v21  ;;  %v175_v21 = vadd.f32 %v174_v9, %v173_v61 }
  0x82   :  { %v237_v25 = vpop.eup %236  ;;  %v57_v26 = vsel %vm26_vm0, %v235_v22, 0.0  ;;  %v184_v22 = vadd.f32 %v183_v10, %v182_v62 }
  0x83   :  { %238 = vpow2.f32 %v49_v23  ;;  %58 = vadd.xlane.f32.xlu0 %v57_v26  ;;  %v51_v27 = vsel %vm26_vm0, %v237_v25, 0.0 }
  0x84   :  { %240 = vpow2.f32 %v45_v24  ;;  %52 = vadd.xlane.f32.xlu2 %v51_v27  ;;  %v185_v26 = vrot.slane %v184_v22, 2 }
  0x86   :  { %v186_v28 = vadd.f32 %v185_v26, %v184_v22 }
  0x89   :  { %v239_v29 = vpop.eup %238 }
  0x8a   :  { %v241_v30 = vpop.eup %240  ;;  %v60_v31 = vsel %vm26_vm0, %v239_v29, 0.0 }
  0x8b   :  { %61 = vadd.xlane.f32.xlu1 %v60_v31  ;;  %v54_v32 = vsel %vm26_vm0, %v241_v30, 0.0 }
  0x8c   :  { %55 = vadd.xlane.f32.xlu2 %v54_v32  ;;  %v187_v32 = vrot.slane %v186_v28, 1 }
  0x8e   :  { %v188_v35 = vadd.f32 %v187_v32, %v186_v28 }
  0x90   :  { %v190_v37 = vsel %vm149_vm13, %v188_v35, 0.0 }
  0x97   :  { %101 = vperm.xlu0 %232, %v92_v34  }
  0xa4   :  { %107 = vperm.xlu2 %231, %v96_v39   ;;  %104 = vperm.xlu1 %233, %v94_v40  }
  0xf6   :  { %v59_v59 = vpop.xlane.xlu0 %58 }
  0xf7   :  { %v53_v42 = vpop.xlane.xlu2 %52 }
  0xf8   :  { %242 = vlog2.f32 %v53_v42 }
  0xfe   :  { %v243_v46 = vpop.eup %242  ;;  %v62_v50 = vpop.xlane.xlu1 %61 }
  0xff   :  { %v64_v51 = vmul.f32 0.6931472, %v243_v46  ;;  %244 = vlog2.f32 %v62_v50  ;;  %v56_v52 = vpop.xlane.xlu2 %55 }
 0x100   :  { %246 = vlog2.f32 %v56_v52 }
 0x101   :  { %v71_v58 = vadd.f32 %v64_v51, %v331_v13  ;;  %248 = vlog2.f32 %v59_v59 }
 0x103   :  { %v75_v60 = vsub.f32 %v302_v1, %v71_v58 }
 0x105   :  { %v245_v63 = vpop.eup %244  ;;  %v113_v2 = vsel %vm109_vm14, %v75_v60, 0.0 }
 0x106   :  { %v247_v3 = vpop.eup %246  ;;  %v70_v4 = vmul.f32 0.6931472, %v245_v63  ;;  %v117_v5 = vsel %vm26_vm0, %v113_v2, 0.0 }
 0x107   :  { %v66_v6 = vmul.f32 0.6931472, %v247_v3  ;;  %118 = vadd.xlane.f32.xlu2 %v117_v5  ;;  %v108_v13 = vpop.permute.xlu2 %107  ;;  %v249_v16 = vpop.eup %248 }
 0x108   :  { %v74_v11 = vadd.f32 %v70_v4, %v337_v18  ;;  %vm112_vm1 = vcmp.eq.s32.totalorder %v373_v54, %v108_v13  ;;  %v68_v18 = vmul.f32 0.6931472, %v249_v16 }
 0x109   :  { %v72_v1 = vadd.f32 %v66_v6, %v339_v19  ;;  %v102_v14 = vpop.permute.xlu0 %101  ;;  %v176_v19 = vrot.slane %v175_v21, 2 }
 0x10a   :  { %vm110_vm15 = vcmp.eq.s32.totalorder %v373_v54, %v102_v14  ;;  %v78_v15 = vsub.f32 %v318_v7, %v74_v11  ;;  %v73_v7 = vadd.f32 %v68_v18, %v329_v12 }
 0x10b   :  { %v76_v17 = vsub.f32 %v323_v8, %v72_v1  ;;  %v177_v27 = vadd.f32 %v176_v19, %v175_v21 }
 0x10c   :  { %v116_v20 = vsel %vm112_vm1, %v78_v15, 0.0  ;;  %v77_v8 = vsub.f32 %v297_v0, %v73_v7 }
 0x10d   :  { %v126_v23 = vsel %vm26_vm0, %v116_v20, 0.0  ;;  %v114_v24 = vsel %vm110_vm15, %v76_v17, 0.0  ;;  %v178_v31 = vrot.slane %v177_v27, 1 }
 0x10e   :  { %v120_v25 = vsel %vm26_vm0, %v114_v24, 0.0 }
 0x10f   :  { %127 = vadd.xlane.f32.xlu2 %v126_v23  ;;  %121 = vadd.xlane.f32.xlu1 %v120_v25  ;;  %v179_v34 = vadd.f32 %v178_v31, %v177_v27 }
 0x111   :  { %v189_v36 = vsel %vm149_vm13, %v179_v34, 0.0 }
 0x112   :  { %v191_v12 = vadd.f32 %v190_v37, %v189_v36 }
 0x116   :  { %v105_v29 = vpop.permute.xlu1 %104 }
 0x117   :  { %vm111_vm2 = vcmp.eq.s32.totalorder %v373_v54, %v105_v29 }
 0x118   :  { %v115_v30 = vsel %vm111_vm2, %v77_v8, 0.0 }
 0x119   :  { %v123_v33 = vsel %vm26_vm0, %v115_v30, 0.0  ;;  %vm16_vm0 = vcmask 8192  }
 0x11a   :  { %124 = vadd.xlane.f32.xlu0 %v123_v33  ;;  %17 = vst.msk [vmem:[#allocation2] sm:$0x1] %vm16_vm0, %v277_v44 }
 0x121   :  { %v192_v13 = vld [vmem:[#allocation2] sm:$0x1] }
 0x127   :  { %201 = vperm.xlu2 %231, %v191_v12  }
 0x17a   :  { %v119_v38 = vpop.xlane.xlu2 %118 }
 0x17b   :  { %v141_v39 = vsub.f32 0.0, %v119_v38 }
 0x17d   :  { %v145_v0 = vmul.f32 %v360_v45, %v141_v39 }
 0x17f   :  { %v150_v43 = vsel %vm149_vm13, %v145_v0, 0.0 }
 0x182   :  { %v122_v40 = vpop.xlane.xlu1 %121  ;;  %v128_v46 = vpop.xlane.xlu2 %127 }
 0x183   :  { %v142_v41 = vsub.f32 0.0, %v122_v40  ;;  %v144_v52 = vsub.f32 0.0, %v128_v46 }
 0x185   :  { %v146_v42 = vmul.f32 %v363_v47, %v142_v41  ;;  %v148_v57 = vmul.f32 %v366_v48, %v144_v52 }
 0x187   :  { %v151_v50 = vsel %vm149_vm13, %v146_v42, 0.0  ;;  %v160_v45 = vsel %vm149_vm13, %v148_v57, 0.0 }
 0x188   :  { %v152_v51 = vadd.f32 %v151_v50, %v150_v43 }
 0x18a   :  { %v153_v53 = vrot.slane %v152_v51, 4  ;;  %v202_v1 = vpop.permute.xlu2 %201 }
 0x18c   :  { %v154_v55 = vadd.f32 %v153_v53, %v152_v51 }
 0x18d   :  { %v125_v56 = vpop.xlane.xlu0 %124 }
 0x18e   :  { %v143_v58 = vsub.f32 0.0, %v125_v56  ;;  %v155_v60 = vrot.slane %v154_v55, 2 }
 0x190   :  { %v147_v59 = vmul.f32 %v369_v49, %v143_v58  ;;  %v156_v63 = vadd.f32 %v155_v60, %v154_v55 }
 0x192   :  { %v159_v47 = vsel %vm149_vm13, %v147_v59, 0.0  ;;  %v157_v4 = vrot.slane %v156_v63, 1 }
 0x193   :  { %v161_v61 = vadd.f32 %v160_v45, %v159_v47 }
 0x194   :  { %v158_v6 = vadd.f32 %v157_v4, %v156_v63 }
 0x195   :  { %v162_v62 = vrot.slane %v161_v61, 4 }
 0x196   :  { %v168_v48 = vsel %vm149_vm13, %v158_v6, 0.0 }
 0x197   :  { %v163_v2 = vadd.f32 %v162_v62, %v161_v61 }
 0x199   :  { %v164_v3 = vrot.slane %v163_v2, 2 }
 0x19b   :  { %v165_v5 = vadd.f32 %v164_v3, %v163_v2 }
 0x19d   :  { %v166_v9 = vrot.slane %v165_v5, 1 }
 0x19f   :  { %v167_v10 = vadd.f32 %v166_v9, %v165_v5 }
 0x1a1   :  { %v169_v11 = vsel %vm149_vm13, %v167_v10, 0.0 }
 0x1a2   :  { %v170_v49 = vadd.f32 %v169_v11, %v168_v48 }
 0x1a4   :  { %196 = vperm.xlu1 %233, %v170_v49  }
 0x216   :  { %v197_v14 = vpop.permute.xlu1 %196 }
 0x217   :  { %v204_v15 = vsel %vm193_vm3, %v197_v14, %v202_v1 }
 0x218   :  { %v205_v16 = vadd.f32 %v204_v15, %v192_v13 }
 0x21a   :  { %207 = vst.msk [vmem:[#allocation2] sm:$0x1] %vm16_vm0, %v205_v16 }
 0x21b   :  { %218 = dma.vmem_to_hbm [thread:$0]  %s214_s24, 16, %s216_s27, [#allocation3]  }
 0x21c   :  { %274 = dma.done.wait [#allocation3], 16  }
 0x21d   :  { %275 = vsyncadd [#allocation3], 4294967280 }
 0x21e   :  { %223 = vsyncpa [#allocation3], 1 }

</bundles_post_ra>
